<compile_context>
chip_gen: v7x
topology: tpu7x:2x2x1
jax: 0.10.0
libtpu: 0.0.40
codegen_flags: <defaults>
</compile_context>

<pallas_src>
import functools

import jax
import jax.numpy as jnp
from jax.experimental import pallas as pl
from jax.experimental.pallas import tpu as pltpu

# Logical (PyTorch) dims.
D_IN, H1, H2, D_OUT = 2, 100, 200, 5
# Padded dims: hidden dims lane-padded to 128 multiples; output padded to 8
# (narrow output -> 16x less HBM writeback than padding to 128).
H1P, H2P, D_OUTP = 128, 256, 8


def _round_up(n, m):
    return ((n + m - 1) // m) * m


def _pad_to(a, shape):
    return jnp.pad(a, [(0, s - d) for d, s in zip(a.shape, shape)])


def _mlp_kernel(x_ref, w1_ref, b1_ref, w2_ref, b2_ref, w3_ref, b3_ref, o_ref):
    x = x_ref[...]                                     # (TB, 2) f32

    # fc1 + ReLU: K=2 contraction as two VPU broadcast FMAs (no MXU pass on a
    # >98%-zero-padded K dimension).
    h1 = (x[:, 0:1] * w1_ref[0:1, :]
          + x[:, 1:2] * w1_ref[1:2, :]
          + b1_ref[...])                               # (TB, 128) f32
    h1 = jnp.maximum(h1, 0.0)

    # fc2 + ReLU: bf16 MXU matmul, f32 accumulation, f32 bias/ReLU.
    h2 = jnp.dot(h1.astype(jnp.bfloat16), w2_ref[...],
                 preferred_element_type=jnp.float32)   # (TB, 256) f32
    h2 = jnp.maximum(h2 + b2_ref[...], 0.0)

    # fc3 (no activation): bf16 MXU matmul into the narrow 8-wide output.
    out = jnp.dot(h2.astype(jnp.bfloat16), w3_ref[...],
                  preferred_element_type=jnp.float32)  # (TB, 8) f32
    o_ref[...] = (out + b3_ref[...]).astype(o_ref.dtype)


def pack_params(params):
    """One-time padding / dtype packing of the PyTorch-layout params.

    Input: (w1, b1, w2, b2, w3, b3) with weights stored (in, out).
    Output: padded params ready for net_forward (w2/w3 in bf16).
    """
    w1, b1, w2, b2, w3, b3 = params
    w1p = _pad_to(w1, (D_IN, H1P)).astype(jnp.float32)
    b1p = _pad_to(b1.reshape(1, -1), (1, H1P)).astype(jnp.float32)
    w2p = _pad_to(w2, (H1P, H2P)).astype(jnp.bfloat16)
    b2p = _pad_to(b2.reshape(1, -1), (1, H2P)).astype(jnp.float32)
    w3p = _pad_to(w3, (H2P, D_OUTP)).astype(jnp.bfloat16)
    b3p = _pad_to(b3.reshape(1, -1), (1, D_OUTP)).astype(jnp.float32)
    return (w1p, b1p, w2p, b2p, w3p, b3p)


def _choose_tb(B):
    """Batch tile: multiple of 8, capped at 2048, >=2 grid steps when B>=16."""
    b8 = _round_up(max(B, 1), 8)
    tb = min(2048, b8)
    if b8 >= 16:
        # Guarantee at least 2 grid steps so v7x's two TensorCores both work.
        tb = min(tb, _round_up(pl.cdiv(b8, 2), 8))
    return tb


@functools.partial(jax.jit, static_argnames=())
def net_forward(x, packed_params):
    """Forward pass of Net. x: (B, 2) float32. Returns (B, 5) float32."""
    w1p, b1p, w2p, b2p, w3p, b3p = packed_params
    B = x.shape[0]

    TB = _choose_tb(B)
    B_pad = _round_up(B, TB)
    x_pad = _pad_to(x.astype(jnp.float32), (B_pad, D_IN))

    grid = (B_pad // TB,)
    resident = lambda shape: pl.BlockSpec(shape, lambda i: (0, 0))

    out_padded = pl.pallas_call(
        _mlp_kernel,
        out_shape=jax.ShapeDtypeStruct((B_pad, D_OUTP), jnp.float32),
        grid_spec=pltpu.PrefetchScalarGridSpec(
            num_scalar_prefetch=0,
            grid=grid,
            in_specs=[
                pl.BlockSpec((TB, D_IN), lambda i: (i, 0)),   # x tile
                resident((D_IN, H1P)),                        # w1 (f32)
                resident((1, H1P)),                           # b1 (f32)
                resident((H1P, H2P)),                         # w2 (bf16)
                resident((1, H2P)),                           # b2 (f32)
                resident((H2P, D_OUTP)),                      # w3 (bf16)
                resident((1, D_OUTP)),                        # b3 (f32)
            ],
            out_specs=pl.BlockSpec((TB, D_OUTP), lambda i: (i, 0)),
        ),
        compiler_params=pltpu.CompilerParams(
            dimension_semantics=("parallel",),
        ),
    )(x_pad, w1p, b1p, w2p, b2p, w3p, b3p)

    # Slice back to the logical (B, 5) result.
    return out_padded[:B, :D_OUT]


def init_params(key):
    """Deterministic init mimicking PyTorch Linear's U(-1/sqrt(fan_in), ...).

    Weights are stored (in_features, out_features); biases as (out,).
    """
    dims = [(D_IN, H1), (H1, H2), (H2, D_OUT)]
    params = []
    for (fan_in, fan_out) in dims:
        key, kw, kb = jax.random.split(key, 3)
        bound = 1.0 / jnp.sqrt(jnp.float32(fan_in))
        w = jax.random.uniform(kw, (fan_in, fan_out), jnp.float32,
                               minval=-bound, maxval=bound)
        b = jax.random.uniform(kb, (fan_out,), jnp.float32,
                               minval=-bound, maxval=bound)
        params.extend([w, b])
    return tuple(params)


def reference_forward(x, params):
    """Pure-JAX f32 reference for correctness check."""
    w1, b1, w2, b2, w3, b3 = params
    h1 = jnp.maximum(x @ w1 + b1, 0.0)
    h2 = jnp.maximum(h1 @ w2 + b2, 0.0)
    return h2 @ w3 + b3


if __name__ == "__main__":
    key = jax.random.PRNGKey(0)
    key, kx = jax.random.split(key)

    # Small batch of 2-dim states (matches fc1's in_features=2).
    x = jax.random.normal(kx, (8, 2), jnp.float32)
    params = init_params(key)
    packed = pack_params(params)          # one-time padding / bf16 cast

    out = net_forward(x, packed)
    out = jax.block_until_ready(out)

    ref = reference_forward(x, params)
    assert out.shape == (8, 5), out.shape
    # bf16 MXU operands (f32 accumulation) -> relaxed tolerance vs f32 ref.
    assert jnp.allclose(out, ref, atol=2e-2, rtol=2e-2), \
        f"max err {jnp.max(jnp.abs(out - ref))}"

    print("KERNEL_OK")
</pallas_src>

<mosaic_0001>
module attributes {stable_mosaic.version = 11 : i64} {
  func.func @_mlp_kernel(%arg0: i32, %arg1: memref<8x2xf32, #tpu.memory_space<vmem>>, %arg2: memref<2x128xf32, #tpu.memory_space<vmem>>, %arg3: memref<1x128xf32, #tpu.memory_space<vmem>>, %arg4: memref<128x256xbf16, #tpu.memory_space<vmem>>, %arg5: memref<1x256xf32, #tpu.memory_space<vmem>>, %arg6: memref<256x8xbf16, #tpu.memory_space<vmem>>, %arg7: memref<1x8xf32, #tpu.memory_space<vmem>>, %arg8: memref<8x8xf32, #tpu.memory_space<vmem>>) attributes {dimension_semantics = [#tpu.dimension_semantics<parallel>], iteration_bounds = array<i64: 1>, scalar_prefetch = 0 : i64, scratch_operands = 0 : i64, tpu.core_type = #tpu.core_type<tc>, window_params = [{transform_indices = @transform_0, window_bounds = array<i64: 8, 2>}, {pipeline_mode = #tpu.pipeline_mode<synchronous>, transform_indices = @transform_1, window_bounds = array<i64: 2, 128>}, {pipeline_mode = #tpu.pipeline_mode<synchronous>, transform_indices = @transform_2, window_bounds = array<i64: 1, 128>}, {pipeline_mode = #tpu.pipeline_mode<synchronous>, transform_indices = @transform_3, window_bounds = array<i64: 128, 256>}, {pipeline_mode = #tpu.pipeline_mode<synchronous>, transform_indices = @transform_4, window_bounds = array<i64: 1, 256>}, {pipeline_mode = #tpu.pipeline_mode<synchronous>, transform_indices = @transform_5, window_bounds = array<i64: 256, 8>}, {pipeline_mode = #tpu.pipeline_mode<synchronous>, transform_indices = @transform_6, window_bounds = array<i64: 1, 8>}, {transform_indices = @transform_7, window_bounds = array<i64: 8, 8>}]} {
    %c0 = arith.constant 0 : index
    %c0_0 = arith.constant 0 : index
    %0 = vector.load %arg1[%c0, %c0_0] : memref<8x2xf32, #tpu.memory_space<vmem>>, vector<8x2xf32>
    %1 = vector.extract_strided_slice %0 {offsets = [0, 0], sizes = [8, 1], strides = [1, 1]} : vector<8x2xf32> to vector<8x1xf32>
    %c0_1 = arith.constant 0 : index
    %c0_2 = arith.constant 0 : index
    %2 = vector.load %arg2[%c0_1, %c0_2] : memref<2x128xf32, #tpu.memory_space<vmem>>, vector<1x128xf32>
    %3 = vector.broadcast %1 : vector<8x1xf32> to vector<8x128xf32>
    %4 = vector.broadcast %2 : vector<1x128xf32> to vector<8x128xf32>
    %5 = arith.mulf %3, %4 : vector<8x128xf32>
    %6 = vector.extract_strided_slice %0 {offsets = [0, 1], sizes = [8, 1], strides = [1, 1]} : vector<8x2xf32> to vector<8x1xf32>
    %c1 = arith.constant 1 : index
    %c0_3 = arith.constant 0 : index
    %7 = vector.load %arg2[%c1, %c0_3] : memref<2x128xf32, #tpu.memory_space<vmem>>, vector<1x128xf32>
    %8 = vector.broadcast %6 : vector<8x1xf32> to vector<8x128xf32>
    %9 = vector.broadcast %7 : vector<1x128xf32> to vector<8x128xf32>
    %10 = arith.mulf %8, %9 : vector<8x128xf32>
    %11 = arith.addf %5, %10 : vector<8x128xf32>
    %c0_4 = arith.constant 0 : index
    %c0_5 = arith.constant 0 : index
    %12 = vector.load %arg3[%c0_4, %c0_5] : memref<1x128xf32, #tpu.memory_space<vmem>>, vector<1x128xf32>
    %13 = vector.broadcast %12 : vector<1x128xf32> to vector<8x128xf32>
    %14 = arith.addf %11, %13 : vector<8x128xf32>
    %cst = arith.constant 0.000000e+00 : f32
    %15 = vector.broadcast %cst : f32 to vector<8x128xf32>
    %16 = arith.maximumf %14, %15 : vector<8x128xf32>
    %17 = arith.truncf %16 : vector<8x128xf32> to vector<8x128xbf16>
    %c0_6 = arith.constant 0 : index
    %c0_7 = arith.constant 0 : index
    %18 = vector.load %arg4[%c0_6, %c0_7] : memref<128x256xbf16, #tpu.memory_space<vmem>>, vector<128x256xbf16>
    %cst_8 = arith.constant dense<0.000000e+00> : vector<8x256xf32>
    %19 = tpu.matmul %17, %18, %cst_8 {dimension_numbers = #tpu.dot_dimension_numbers<[1], [0], [0], [1], [0, 0, 1, 1], [], []>} : vector<8x128xbf16>, vector<128x256xbf16>, vector<8x256xf32> -> vector<8x256xf32>
    %c0_9 = arith.constant 0 : index
    %c0_10 = arith.constant 0 : index
    %20 = vector.load %arg5[%c0_9, %c0_10] : memref<1x256xf32, #tpu.memory_space<vmem>>, vector<1x256xf32>
    %21 = vector.broadcast %20 : vector<1x256xf32> to vector<8x256xf32>
    %22 = arith.addf %19, %21 : vector<8x256xf32>
    %cst_11 = arith.constant 0.000000e+00 : f32
    %23 = vector.broadcast %cst_11 : f32 to vector<8x256xf32>
    %24 = arith.maximumf %22, %23 : vector<8x256xf32>
    %25 = arith.truncf %24 : vector<8x256xf32> to vector<8x256xbf16>
    %c0_12 = arith.constant 0 : index
    %c0_13 = arith.constant 0 : index
    %26 = vector.load %arg6[%c0_12, %c0_13] : memref<256x8xbf16, #tpu.memory_space<vmem>>, vector<256x8xbf16>
    %cst_14 = arith.constant dense<0.000000e+00> : vector<8x8xf32>
    %27 = tpu.matmul %25, %26, %cst_14 {dimension_numbers = #tpu.dot_dimension_numbers<[1], [0], [0], [1], [0, 0, 1, 1], [], []>} : vector<8x256xbf16>, vector<256x8xbf16>, vector<8x8xf32> -> vector<8x8xf32>
    %c0_15 = arith.constant 0 : index
    %c0_16 = arith.constant 0 : index
    %28 = vector.load %arg7[%c0_15, %c0_16] : memref<1x8xf32, #tpu.memory_space<vmem>>, vector<1x8xf32>
    %29 = vector.broadcast %28 : vector<1x8xf32> to vector<8x8xf32>
    %30 = arith.addf %27, %29 : vector<8x8xf32>
    %c0_17 = arith.constant 0 : index
    %c0_18 = arith.constant 0 : index
    %31 = vector.load %arg8[%c0_17, %c0_18] : memref<8x8xf32, #tpu.memory_space<vmem>>, vector<8x8xf32>
    tpu.vector_store %arg8[%c0_17, %c0_18], %30 {strides = array<i32>} : memref<8x8xf32, #tpu.memory_space<vmem>>, vector<8x8xf32>,
    return
  }
  func.func @transform_0(%arg0: i32) -> (i32, i32) {
    %c0_i32 = arith.constant 0 : i32
    %c0_i32_0 = arith.constant 0 : i32
    return %arg0, %c0_i32 : i32, i32
  }
  func.func @transform_1(%arg0: i32) -> (i32, i32) {
    %c0_i32 = arith.constant 0 : i32
    %c0_i32_0 = arith.constant 0 : i32
    %c0_i32_1 = arith.constant 0 : i32
    return %c0_i32, %c0_i32_0 : i32, i32
  }
  func.func @transform_2(%arg0: i32) -> (i32, i32) {
    %c0_i32 = arith.constant 0 : i32
    %c0_i32_0 = arith.constant 0 : i32
    %c0_i32_1 = arith.constant 0 : i32
    return %c0_i32, %c0_i32_0 : i32, i32
  }
  func.func @transform_3(%arg0: i32) -> (i32, i32) {
    %c0_i32 = arith.constant 0 : i32
    %c0_i32_0 = arith.constant 0 : i32
    %c0_i32_1 = arith.constant 0 : i32
    return %c0_i32, %c0_i32_0 : i32, i32
  }
  func.func @transform_4(%arg0: i32) -> (i32, i32) {
    %c0_i32 = arith.constant 0 : i32
    %c0_i32_0 = arith.constant 0 : i32
    %c0_i32_1 = arith.constant 0 : i32
    return %c0_i32, %c0_i32_0 : i32, i32
  }
  func.func @transform_5(%arg0: i32) -> (i32, i32) {
    %c0_i32 = arith.constant 0 : i32
    %c0_i32_0 = arith.constant 0 : i32
    %c0_i32_1 = arith.constant 0 : i32
    return %c0_i32, %c0_i32_0 : i32, i32
  }
  func.func @transform_6(%arg0: i32) -> (i32, i32) {
    %c0_i32 = arith.constant 0 : i32
    %c0_i32_0 = arith.constant 0 : i32
    %c0_i32_1 = arith.constant 0 : i32
    return %c0_i32, %c0_i32_0 : i32, i32
  }
  func.func @transform_7(%arg0: i32) -> (i32, i32) {
    %c0_i32 = arith.constant 0 : i32
    %c0_i32_0 = arith.constant 0 : i32
    return %arg0, %c0_i32 : i32, i32
  }
}

</mosaic_0001>

<bundles_post_ra>
// kernel: net_forward.1
= control target key start
LH: loop header
LB: loop body
LE: loop exit
PB: predicated region body
PF: predicated region fallthrough
CT: control target
= control target key end

     0   :  { %v532_v1 = vmov 0   ;;  %v533_v7 = vmov 1   ;;  %s701_s0 = inlined_call_operand.vmem [shape: f32[8,2], index: 0, kind: input, shape index: {}]   ;;  %s702_s1 = inlined_call_operand.vmem [shape: f32[2,128], index: 1, kind: input, shape index: {}]   ;;  %s703_s2 = inlined_call_operand.vmem [shape: f32[1,128], index: 2, kind: input, shape index: {}]   ;;  %s704_s3 = inlined_call_operand.vmem [shape: bf16[128,256], index: 3, kind: input, shape index: {}]   ;;  %s705_s4 = inlined_call_operand.vmem [shape: f32[1,256], index: 4, kind: input, shape index: {}]   ;;  %s706_s5 = inlined_call_operand.vmem [shape: bf16[256,8], index: 5, kind: input, shape index: {}]   ;;  %s707_s6 = inlined_call_operand.vmem [shape: f32[1,8], index: 6, kind: input, shape index: {}]   ;;  %s708_s7 = inlined_call_operand.hbm [shape: f32[8,8], index: 7, kind: output, shape index: {}]  }
   0x1   :  { %v28_v0 = vld [vmem:[%s701_s0] sm:$0xff]  ;;  %466 = vset.pattern.permute.xlu0 %v532_v1  ;;  %201 = vmatprep.mubr.bf16.mxu0 %v532_v1  ;;  %v471_v4 = vld [vmem:[%s704_s3 + $0x14] ss:$8 sps:$4 sm:$0xff]   ;;  %v473_v5 = vld [vmem:[%s704_s3 + $0x10] ss:$8 sps:$4 sm:$0xff]  }
   0x2   :  { %v468_v2 = vld [vmem:[%s704_s3 + $0x4] ss:$8 sps:$4 sm:$0xff]   ;;  %v470_v3 = vld [vmem:[%s704_s3] ss:$8 sps:$4 sm:$0xff]   ;;  %32 = vperm.xlu0 %466, %v28_v0   ;;  %v477_v9 = vld [vmem:[%s704_s3 + $0x34] ss:$8 sps:$4 sm:$0xff]  }
   0x3   :  { %169 = vmatprep.subr.bf16.mxu0 %v468_v2  ;;  %v474_v6 = vld [vmem:[%s704_s3 + $0x24] ss:$8 sps:$4 sm:$0xff]   ;;  %v476_v8 = vld [vmem:[%s704_s3 + $0x20] ss:$8 sps:$4 sm:$0xff]   ;;  %v479_v10 = vld [vmem:[%s704_s3 + $0x30] ss:$8 sps:$4 sm:$0xff]  }
   0x4   :  { %170 = vmatpush1.bf16.msra.mxu0 %v470_v3  ;;  %v480_v11 = vld [vmem:[%s704_s3 + $0x44] ss:$8 sps:$4 sm:$0xff]   ;;  %v482_v12 = vld [vmem:[%s704_s3 + $0x40] ss:$8 sps:$4 sm:$0xff]   ;;  %v483_v13 = vld [vmem:[%s704_s3 + $0x54] ss:$8 sps:$4 sm:$0xff]  }
   0x5   :  { %171 = vmatprep.subr.bf16.mxu0 %v471_v4  ;;  %v492_v14 = vld [vmem:[%s706_s5 + $0x40] sm:$0xff]   ;;  %v494_v16 = vld [vmem:[%s706_s5 + $0x48] sm:$0xff]   ;;  %v485_v17 = vld [vmem:[%s704_s3 + $0x50] ss:$8 sps:$4 sm:$0xff]  }
   0x6   :  { %467 = vset.pattern.permute.xlu0 %v533_v7  ;;  %v493_v15 = vld [vmem:[%s706_s5] sm:$0xff]   ;;  %441 = vmatprep.subr.bf16.mxu1 %v492_v14  ;;  %v495_v19 = vld [vmem:[%s706_s5 + $0x8] sm:$0xff]   ;;  %v496_v20 = vld [vmem:[%s706_s5 + $0x50] sm:$0xff]  }
   0x7   :  { %42 = vperm.xlu0 %467, %v28_v0   ;;  %v486_v18 = vld [vmem:[%s704_s3 + $0x64] ss:$8 sps:$4 sm:$0xff]   ;;  %442 = vmatpush3.bf16.msra.mxu1 %v493_v15  ;;  %v488_v21 = vld [vmem:[%s704_s3 + $0x60] ss:$8 sps:$4 sm:$0xff]   ;;  %v489_v22 = vld [vmem:[%s704_s3 + $0x74] ss:$8 sps:$4 sm:$0xff]  }
   0x8   :  { %172 = vmatpush1.bf16.msra.mxu0 %v473_v5  ;;  %443 = vmatprep.subr.bf16.mxu1 %v494_v16  ;;  %v497_v23 = vld [vmem:[%s706_s5 + $0x10] sm:$0xff]   ;;  %v498_v24 = vld [vmem:[%s706_s5 + $0x58] sm:$0xff]  }
   0x9   :  { %173 = vmatprep.subr.bf16.mxu0 %v474_v6 }
   0xb   :  { %444 = vmatpush3.bf16.msra.mxu1 %v495_v19 }
   0xc   :  { %174 = vmatpush1.bf16.msra.mxu0 %v476_v8  ;;  %445 = vmatprep.subr.bf16.mxu1 %v496_v20 }
   0xd   :  { %175 = vmatprep.subr.bf16.mxu0 %v477_v9 }
  0x10   :  { %176 = vmatpush1.bf16.msra.mxu0 %v479_v10 }
  0x11   :  { %177 = vmatprep.subr.bf16.mxu0 %v480_v11 }
  0x14   :  { %178 = vmatpush1.bf16.msra.mxu0 %v482_v12 }
  0x15   :  { %179 = vmatprep.subr.bf16.mxu0 %v483_v13 }
  0x18   :  { %180 = vmatpush1.bf16.msra.mxu0 %v485_v17 }
  0x19   :  { %181 = vmatprep.subr.bf16.mxu0 %v486_v18 }
  0x1a   :  { %12 = vsyncpa [#allocation3], 0  ;;  %v491_v25 = vld [vmem:[%s704_s3 + $0x70] ss:$8 sps:$4 sm:$0xff]   ;;  %446 = vmatpush3.bf16.msra.mxu1 %v497_v23  ;;  %v500_v27 = vld [vmem:[%s706_s5 + $0x60] sm:$0xff]   ;;  %v79_v46 = vlaneseq  ;;  %vm389_vm0 = vcmask 64512  }
  0x1b   :  { %v499_v26 = vld [vmem:[%s706_s5 + $0x18] sm:$0xff]   ;;  %447 = vmatprep.subr.bf16.mxu1 %v498_v24  ;;  %v501_v28 = vld [vmem:[%s706_s5 + $0x20] sm:$0xff]   ;;  %v502_v29 = vld [vmem:[%s706_s5 + $0x68] sm:$0xff]  }
  0x1c   :  { %182 = vmatpush1.bf16.msra.mxu0 %v488_v21  ;;  %v503_v30 = vld [vmem:[%s706_s5 + $0x28] sm:$0xff]   ;;  %v405_v32 = vld [vmem:[%s702_s1] ss:$0 sm:$0xff]  ;;  %v406_v33 = vld [vmem:[%s702_s1 + $0x1] ss:$0 sm:$0xff]  ;;  %v80_v47 = vshrl.u32 %v79_v46, 7 }
  0x1d   :  { %183 = vmatprep.subr.bf16.mxu0 %v489_v22  ;;  %v407_v37 = vld [vmem:[%s703_s2] ss:$0 sm:$0xff]  ;;  %v504_v42 = vld [vmem:[%s706_s5 + $0x70] sm:$0xff]   ;;  %v506_v44 = vld [vmem:[%s706_s5 + $0x78] sm:$0xff]  }
  0x1e   :  { %448 = vmatpush3.bf16.msra.mxu1 %v499_v26  ;;  %v505_v43 = vld [vmem:[%s706_s5 + $0x30] sm:$0xff]   ;;  %v507_v45 = vld [vmem:[%s706_s5 + $0x38] sm:$0xff]   ;;  %v81_v48 = vsub.s32 0, %v80_v47  ;;  %v77_v49 = vld [vmem:[%s705_s4] sm:$0x3]  ;;  %v85_v50 = vsub.s32 1, %v80_v47 }
  0x1f   :  { %449 = vmatprep.subr.bf16.mxu1 %v500_v27  ;;  %v424_v0 = vld [vmem:[%s707_s6] ss:$0 sm:$0xff]  ;;  %s534_s4 = smov [#allocation2]  }
  0x20   :  { %184 = vmatpush1.bf16.msra.mxu0 %v491_v25  ;;  %v82_v51 = vrot.slane %v77_v49, %v81_v48  ;;  %v86_v52 = vrot.slane %v77_v49, %v85_v50  ;;  %s397_s24 = sshll.u32 %s534_s4, 4  ;;  %s398_s24 = int_to_ptr.vmem [resolvable:$true] %s397_s24 }
  0x21   :  { %s508_s25 = scalar_lea.vmem %s398_s24, 128  ;;  %p513_p1 = scmp.lt.s32.totalorder %s398_s24, %s398_s24 }
  0x22   :  { %450 = vmatpush3.bf16.msra.mxu1 %v501_v28  ;;  %p509_p0 = scmp.ne.s32.totalorder %s398_s24, %s508_s25  ;;  %p514_p2 = scmp.lt.s32.totalorder %s508_s25, %s508_s25 }
  0x23   :  { %451 = vmatprep.subr.bf16.mxu1 %v502_v29 }
  0x24   :  { %p515_p3 = por %p514_p2, %p513_p1 }
  0x26   :  { %452 = vmatpush3.bf16.msra.mxu1 %v503_v30  ;;  %p516_p4 = pnand %p515_p3, %p509_p0 }
  0x27   :  { %453 = vmatprep.subr.bf16.mxu1 %v504_v42 }
  0x2a   :  { %454 = vmatpush3.bf16.msra.mxu1 %v505_v43 }
  0x2b   :  { %455 = vmatprep.subr.bf16.mxu1 %v506_v44 }
  0x2e   :  { %456 = vmatpush3.bf16.msra.mxu1 %v507_v45 }
  0x81   :  { %v33_v31 = vpop.permute.xlu0 %32 }
  0x82   :  { %v39_v35 = vmul.f32 %v405_v32, %v33_v31 }
  0x86   :  { %v43_v34 = vpop.permute.xlu0 %42 }
  0x87   :  { %v49_v36 = vmul.f32 %v406_v33, %v43_v34 }
  0x89   :  { %v50_v38 = vadd.f32 %v49_v36, %v39_v35 }
  0x8b   :  { %v58_v39 = vadd.f32 %v407_v37, %v50_v38 }
  0x8d   :  { %v59_v40 = vmax.f32 %v58_v39, 0.0 }
  0x8f   :  { %v60_v41 = vpack.c.bf16 %v59_v40, %v59_v40 }
  0x91   :  { %202 = vmatmul.mubr.bf16.vlgmr.msra.gmra.mrb[0].mxu0 %v60_v41 }
 0x164   :  { %v203_v53 = vpop.f32.mrb[0].mxu0 }
 0x165   :  { %v204_v54 = vadd.f32 %v203_v53, %v82_v51  ;;  %v205_v55 = vpop.f32.mrb[1].mxu0 }
 0x166   :  { %v206_v56 = vadd.f32 %v205_v55, %v86_v52  ;;  %v207_v57 = vpop.f32.mrb[2].mxu0 }
 0x167   :  { %v210_v58 = vmax.f32 %v204_v54, 0.0  ;;  %v208_v59 = vpop.f32.mrb[3].mxu0 }
 0x168   :  { %v211_v60 = vmax.f32 %v206_v56, 0.0 }
 0x169   :  { %v212_v62 = vpack.c.bf16 %v210_v58, %v210_v58 }
 0x16a   :  { %v213_v61 = vpack.c.bf16 %v211_v60, %v211_v60 }
 0x16c   :  { %381 = vmatprep.mubr.bf16.mxu1 %v213_v61 }
 0x16d   :  { %382 = vmatmul.mubr.bf16.vlgmr.msra.gmra.mrb[0].mxu1 %v212_v62 }
 0x240   :  { %v457_v63 = vpop.f32.mrb[0].mxu1 }
 0x241   :  { %v458_v1 = vpop.f32.mrb[1].mxu1 }
 0x242   :  { %v459_v2 = vadd.f32 %v458_v1, %v457_v63  ;;  %v460_v3 = vpop.f32.mrb[2].mxu1 }
 0x243   :  { %v461_v4 = vpop.f32.mrb[3].mxu1 }
 0x244   :  { %v384_v5 = vadd.f32 %v459_v2, %v424_v0 }
 0x246   :  { %390 = vst.msk [vmem:[#allocation2] sm:$0xff] %vm389_vm0, %v384_v5 }
 0x247   :  { %519 = shalt.err (!%p516_p4)
}
 0x248   :  { %s520_s6 = scalar_lea.hbm %s708_s7, 128 }
 0x249   :  { %p521_p5 = scmp.ne.s32.totalorder %s708_s7, %s520_s6  ;;  %p524_p6 = scmp.lt.u32.totalorder %s520_s6, %s708_s7 }
 0x24b   :  { %p526_p7 = pnand %p524_p6, %p521_p5 }
 0x24d   :  { %529 = shalt.err (!%p526_p7)
}
 0x24e   :  { %400 = dma.vmem_to_hbm [thread:$0]  %s398_s24, 128, %s708_s7, [#allocation3]  }
 0x24f   :  { %530 = dma.done.wait [#allocation3], 128  }
 0x250   :  { %531 = vsyncadd [#allocation3], 4294967168 }
 0x251   :  { %404 = vsyncpa [#allocation3], 1 }

</bundles_post_ra>
